<compile_context>
chip_gen: v7x
topology: tpu7x:2x2x1
jax: 0.10.0
libtpu: 0.0.40
codegen_flags: <defaults>
</compile_context>

<pallas_src>
import jax
import jax.numpy as jnp
from jax.experimental import pallas as pl
from jax.experimental.pallas import tpu as pltpu

_LANES = 128
_SUBLANES = 8
_TARGET_BLOCK_ROWS = 2048  # 2048 x 128 f32 = 1 MiB per input per pipeline buffer


def _bce_partial_kernel(x_ref, y_ref, o_ref):
    """Numerically-stable BCE-with-logits partial sum for one block.

    loss_i = max(x,0) - x*y + log1p(exp(-|x|))   (matches PyTorch BCEWithLogitsLoss)
    Padded tail elements were filled with x=-100, y=0 in the wrapper and
    contribute ~0 to the sum, so no masking is required here.
    """
    x = x_ref[...].astype(jnp.float32)
    y = y_ref[...].astype(jnp.float32)

    loss = jnp.maximum(x, 0.0) - x * y + jnp.log1p(jnp.exp(-jnp.abs(x)))

    # Fold the (block_rows, 128) block onto an (8, 128) vreg: the reshape
    # respects (8,128) tile boundaries (free) and the axis-0 sum is pure
    # element-wise VPU adds — no cross-lane/XLU reduce in the kernel at all.
    rows = loss.shape[0]
    o_ref[...] = loss.reshape(rows // _SUBLANES, _SUBLANES, _LANES).sum(axis=0)


def _sublane_multiple(dtype) -> int:
    # Sub-32-bit dtypes pack along sublanes: bf16 -> 16, int8/bool -> 32.
    bits = jnp.dtype(dtype).itemsize * 8
    return max(_SUBLANES, (32 // bits) * _SUBLANES)


def _round_up(a: int, b: int) -> int:
    return (a + b - 1) // b * b


@jax.jit
def bce_loss_with_logits(outputs, labels):
    """Equivalent of nn.BCEWithLogitsLoss()(outputs, labels.float())."""
    n = outputs.size
    x = outputs.reshape(-1)
    y = labels.reshape(-1)

    sub = max(_sublane_multiple(x.dtype), _sublane_multiple(y.dtype))
    rows_needed = pl.cdiv(n, _LANES)
    block_rows = _round_up(min(_TARGET_BLOCK_ROWS, _round_up(rows_needed, sub)), sub)
    padded_rows = _round_up(rows_needed, block_rows)
    pad = padded_rows * _LANES - n

    if pad:
        # Loss-neutral padding: max(-100,0)=0, (-100)*0=0, log1p(exp(-100))~=0 (f32).
        # (Large finite negative, not -inf, to avoid NaN from -inf*0.)
        x = jnp.pad(x, (0, pad), constant_values=jnp.asarray(-100.0, x.dtype))
        y = jnp.pad(y, (0, pad), constant_values=jnp.asarray(0, y.dtype))
    x = x.reshape(padded_rows, _LANES)
    y = y.reshape(padded_rows, _LANES)

    num_blocks = padded_rows // block_rows

    partials = pl.pallas_call(
        _bce_partial_kernel,
        out_shape=jax.ShapeDtypeStruct((num_blocks * _SUBLANES, _LANES), jnp.float32),
        grid=(num_blocks,),
        in_specs=[
            pl.BlockSpec((block_rows, _LANES), lambda i: (i, 0)),
            pl.BlockSpec((block_rows, _LANES), lambda i: (i, 0)),
        ],
        out_specs=pl.BlockSpec((_SUBLANES, _LANES), lambda i: (i, 0)),
        compiler_params=pltpu.CompilerParams(
            dimension_semantics=("parallel",)),
    )(x, y)

    # Tiny final reduction + mean; fuses into the surrounding jit.
    return jnp.sum(partials) / jnp.float32(n)


def _reference(logits, labels):
    logits = logits.astype(jnp.float32)
    labels = labels.astype(jnp.float32)
    return jnp.mean(jnp.maximum(logits, 0.0) - logits * labels
                    + jnp.log1p(jnp.exp(-jnp.abs(logits))))


if __name__ == "__main__":
    key = jax.random.PRNGKey(0)
    k1, k2, k3, k4 = jax.random.split(key, 4)

    # Small NCHW-shaped logits and {0,1} labels, like a segmentation head.
    shape = (2, 4, 16, 16)
    logits = jax.random.normal(k1, shape, dtype=jnp.float32)
    labels = (jax.random.uniform(k2, shape) > 0.5).astype(jnp.float32)

    loss = bce_loss_with_logits(logits, labels)
    jax.block_until_ready(loss)
    ref = _reference(logits, labels)
    assert jnp.allclose(loss, ref, rtol=1e-5, atol=1e-6), (loss, ref)

    # Second case with a non-tile-multiple element count to exercise padding.
    shape2 = (3, 5, 7, 11)
    logits2 = jax.random.normal(k3, shape2, dtype=jnp.float32)
    labels2 = (jax.random.uniform(k4, shape2) > 0.5).astype(jnp.float32)
    loss2 = bce_loss_with_logits(logits2, labels2)
    jax.block_until_ready(loss2)
    ref2 = _reference(logits2, labels2)
    assert jnp.allclose(loss2, ref2, rtol=1e-5, atol=1e-6), (loss2, ref2)

    print("KERNEL_OK")
</pallas_src>

<mosaic_0001>
module attributes {stable_mosaic.version = 11 : i64} {
  func.func @_bce_partial_kernel(%arg0: i32, %arg1: memref<16x128xf32, #tpu.memory_space<vmem>>, %arg2: memref<16x128xf32, #tpu.memory_space<vmem>>, %arg3: memref<8x128xf32, #tpu.memory_space<vmem>>) attributes {dimension_semantics = [#tpu.dimension_semantics<parallel>], iteration_bounds = array<i64: 1>, scalar_prefetch = 0 : i64, scratch_operands = 0 : i64, tpu.core_type = #tpu.core_type<tc>, window_params = [{transform_indices = @transform_0, window_bounds = array<i64: 16, 128>}, {transform_indices = @transform_1, window_bounds = array<i64: 16, 128>}, {transform_indices = @transform_2, window_bounds = array<i64: 8, 128>}]} {
    %c0 = arith.constant 0 : index
    %c0_0 = arith.constant 0 : index
    %0 = vector.load %arg1[%c0, %c0_0] : memref<16x128xf32, #tpu.memory_space<vmem>>, vector<16x128xf32>
    %c0_1 = arith.constant 0 : index
    %c0_2 = arith.constant 0 : index
    %1 = vector.load %arg2[%c0_1, %c0_2] : memref<16x128xf32, #tpu.memory_space<vmem>>, vector<16x128xf32>
    %cst = arith.constant 0.000000e+00 : f32
    %2 = vector.broadcast %cst : f32 to vector<16x128xf32>
    %3 = arith.maximumf %0, %2 : vector<16x128xf32>
    %4 = arith.mulf %0, %1 : vector<16x128xf32>
    %5 = arith.subf %3, %4 : vector<16x128xf32>
    %6 = math.absf %0 : vector<16x128xf32>
    %cst_3 = arith.constant 0.000000e+00 : f32
    %7 = vector.broadcast %cst_3 : f32 to vector<16x128xf32>
    %8 = arith.subf %7, %6 : vector<16x128xf32>
    %9 = math.exp %8 : vector<16x128xf32>
    %10 = math.log1p %9 : vector<16x128xf32>
    %11 = arith.addf %5, %10 : vector<16x128xf32>
    %12 = vector.shape_cast %11 : vector<16x128xf32> to vector<2x8x128xf32>
    %cst_4 = arith.constant dense<0.000000e+00> : vector<8x128xf32>
    %13 = vector.multi_reduction <add>, %12, %cst_4 [0] : vector<2x8x128xf32> to vector<8x128xf32>
    %c0_5 = arith.constant 0 : index
    %c0_6 = arith.constant 0 : index
    %14 = vector.load %arg3[%c0_5, %c0_6] : memref<8x128xf32, #tpu.memory_space<vmem>>, vector<8x128xf32>
    tpu.vector_store %arg3[%c0_5, %c0_6], %13 {strides = array<i32>} : memref<8x128xf32, #tpu.memory_space<vmem>>, vector<8x128xf32>,
    return
  }
  func.func @transform_0(%arg0: i32) -> (i32, i32) {
    %c0_i32 = arith.constant 0 : i32
    %c0_i32_0 = arith.constant 0 : i32
    return %arg0, %c0_i32 : i32, i32
  }
  func.func @transform_1(%arg0: i32) -> (i32, i32) {
    %c0_i32 = arith.constant 0 : i32
    %c0_i32_0 = arith.constant 0 : i32
    return %arg0, %c0_i32 : i32, i32
  }
  func.func @transform_2(%arg0: i32) -> (i32, i32) {
    %c0_i32 = arith.constant 0 : i32
    %c0_i32_0 = arith.constant 0 : i32
    return %arg0, %c0_i32 : i32, i32
  }
}

</mosaic_0001>

<bundles_post_ra>
// kernel: bce_loss_with_logits.1
= control target key start
LH: loop header
LB: loop body
LE: loop exit
PB: predicated region body
PF: predicated region fallthrough
CT: control target
= control target key end

     0   :  { %s93_s0 = inlined_call_operand.vmem [shape: f32[16,128], index: 0, kind: input, shape index: {}]   ;;  %s94_s1 = inlined_call_operand.vmem [shape: f32[16,128], index: 1, kind: input, shape index: {}]   ;;  %s95_s2 = inlined_call_operand.vmem [shape: f32[8,128], index: 2, kind: output, shape index: {}]  }
   0x1   :  { %v11_v0 = vld [vmem:[%s93_s0] sm:$0xff]  ;;  %v12_v1 = vld [vmem:[%s93_s0 + $0x8] sm:$0xff] }
   0x2   :  { %v21_v2 = vand.u32 2147483647, %v11_v0  ;;  %v22_v3 = vand.u32 2147483647, %v12_v1  ;;  %v13_v14 = vld [vmem:[%s94_s1] sm:$0xff]  ;;  %v14_v15 = vld [vmem:[%s94_s1 + $0x8] sm:$0xff] }
   0x3   :  { %v15_v17 = vmax.f32 %v11_v0, 0.0  ;;  %v17_v18 = vmul.f32 %v13_v14, %v11_v0  ;;  %v16_v21 = vmax.f32 %v12_v1, 0.0  ;;  %v18_v22 = vmul.f32 %v14_v15, %v12_v1 }
   0x4   :  { %v23_v4 = vsub.f32 0.0, %v21_v2  ;;  %v24_v5 = vsub.f32 0.0, %v22_v3 }
   0x5   :  { %v19_v26 = vsub.f32 %v15_v17, %v17_v18  ;;  %v20_v29 = vsub.f32 %v16_v21, %v18_v22 }
   0x6   :  { %v25_v6 = vmul.f32 1.442695, %v23_v4  ;;  %v27_v7 = vmul.f32 1.442695, %v24_v5 }
   0x8   :  { %55 = vpow2.f32 %v25_v6 }
   0x9   :  { %57 = vpow2.f32 %v27_v7 }
  0x12   :  { %v56_v8 = vpop.eup %55 }
  0x13   :  { %v58_v9 = vpop.eup %57  ;;  %v29_v10 = vadd.f32 1.0, %v56_v8  ;;  %v32_v12 = vmul.f32 -0.5, %v56_v8  ;;  %v35_v19 = vand.u32 2147483647, %v56_v8 }
  0x14   :  { %v38_v11 = vadd.f32 1.0, %v58_v9  ;;  %v41_v13 = vmul.f32 -0.5, %v58_v9  ;;  %v44_v23 = vand.u32 2147483647, %v58_v9 }
  0x15   :  { %59 = vlog2.f32 %v29_v10  ;;  %v33_v16 = vadd.f32 1.0, %v32_v12  ;;  %vm36_vm0 = vcmp.lt.f32.partialorder %v35_v19, 0.0004427343 }
  0x16   :  { %61 = vlog2.f32 %v38_v11  ;;  %v42_v20 = vadd.f32 1.0, %v41_v13  ;;  %vm45_vm1 = vcmp.lt.f32.partialorder %v44_v23, 0.0004427343 }
  0x17   :  { %v34_v24 = vmul.f32 %v56_v8, %v33_v16 }
  0x18   :  { %v43_v27 = vmul.f32 %v58_v9, %v42_v20 }
  0x1f   :  { %v60_v25 = vpop.eup %59 }
  0x20   :  { %v62_v28 = vpop.eup %61  ;;  %v31_v30 = vmul.f32 0.6931472, %v60_v25 }
  0x21   :  { %v40_v31 = vmul.f32 0.6931472, %v62_v28 }
  0x22   :  { %v37_v32 = vsel %vm36_vm0, %v34_v24, %v31_v30 }
  0x23   :  { %v46_v33 = vsel %vm45_vm1, %v43_v27, %v40_v31  ;;  %v47_v34 = vadd.f32 %v37_v32, %v19_v26 }
  0x24   :  { %v48_v35 = vadd.f32 %v46_v33, %v20_v29 }
  0x26   :  { %v49_v36 = vadd.f32 %v48_v35, %v47_v34 }
  0x28   :  { %50 = vst [vmem:[%s95_s2] sm:$0xff] %v49_v36 }

</bundles_post_ra>
